<compile_context>
chip_gen: v7x
topology: tpu7x:2x2x1
jax: 0.10.0
libtpu: 0.0.40
codegen_flags: <defaults>
</compile_context>

<pallas_src>
import jax
import jax.numpy as jnp
from jax.experimental import pallas as pl
from jax.experimental.pallas import tpu as pltpu

OUT_W = 128        # lane-dense output width (q1 -> lane 0, q2 -> lane 1)
TILE_B_MAX = 1024  # max batch rows per grid step (VMEM bound + v7x megacore)


def _round_up(x, m):
    return (x + m - 1) // m * m


def _critic_kernel(obs_ref, act_ref, wt_ref, w1_ref, w2_ref, w3_ref, bias_ref,
                   out_ref, ha_ref):
    """One batch tile of the Critic forward: trunk + both fused Q heads."""
    feat = wt_ref.shape[1]      # feature_dim
    adim = act_ref.shape[1]     # action_dim
    h2 = w2_ref.shape[1]        # 2 * hidden_dim (both heads side by side)
    out_w = out_ref.shape[1]    # 128

    # Packed 1-row vectors (f32): rows 0..2 trunk, 3..4 head biases, 5 out bias.
    bt = bias_ref[0:1, 0:feat]
    ln_g = bias_ref[1:2, 0:feat]
    ln_b = bias_ref[2:3, 0:feat]
    b1 = bias_ref[3:4, 0:h2]
    b2 = bias_ref[4:5, 0:h2]
    b3 = bias_ref[5:6, 0:out_w]

    # ---- trunk: Linear -> LayerNorm -> Tanh, kept in f32 (tiny matmul;
    #      preserves the precision of the features feeding the TD targets) ----
    z = jnp.dot(obs_ref[...], wt_ref[...],
                preferred_element_type=jnp.float32) + bt
    mean = jnp.mean(z, axis=-1, keepdims=True)
    d = z - mean                                    # subtract-then-square var
    var = jnp.mean(d * d, axis=-1, keepdims=True)
    h = jnp.tanh(d * jax.lax.rsqrt(var + 1e-5) * ln_g + ln_b)

    # ---- fused Q heads ----
    # Layer 1 is one MXU push: assemble [h | act] in a VMEM scratch (bf16
    # casts happen here, in-kernel) and hit the fused (feat+adim, 2H) weight.
    ha_ref[:, 0:feat] = h.astype(jnp.bfloat16)
    ha_ref[:, feat:feat + adim] = act_ref[...].astype(jnp.bfloat16)
    x = jnp.dot(ha_ref[...], w1_ref[...],
                preferred_element_type=jnp.float32) + b1
    x = jnp.maximum(x, 0.0)
    # Layer 2: block-diagonal (2H, 2H) weight keeps the two heads independent.
    x = jnp.dot(x.astype(jnp.bfloat16), w2_ref[...],
                preferred_element_type=jnp.float32) + b2
    x = jnp.maximum(x, 0.0)
    # Layer 3: lane-dense (TILE_B, 128) output; q1 in lane 0, q2 in lane 1.
    out = jnp.dot(x.astype(jnp.bfloat16), w3_ref[...],
                  preferred_element_type=jnp.float32) + b3
    out_ref[...] = out.astype(out_ref.dtype)


@jax.jit
def critic_forward(obs, action, kparams):
    B, repr_dim = obs.shape
    adim = action.shape[1]
    feat = kparams["wt"].shape[1]
    h2 = kparams["w2"].shape[1]

    # Pad B so the batch tile is a multiple of 8 and divides the grid evenly.
    tile_b = min(TILE_B_MAX, _round_up(B, 8))
    b_pad = _round_up(B, tile_b)
    if b_pad != B:
        obs = jnp.pad(obs, ((0, b_pad - B), (0, 0)))
        action = jnp.pad(action, ((0, b_pad - B), (0, 0)))
    grid = (b_pad // tile_b,)

    cost = pl.CostEstimate(
        flops=2 * b_pad * (repr_dim * feat + (feat + adim) * h2 + h2 * h2
                           + h2 * OUT_W),
        transcendentals=b_pad * (feat + 1),
        bytes_accessed=(obs.size * 4 + action.size * 4
                        + kparams["wt"].size * 4 + kparams["w1"].size * 2
                        + kparams["w2"].size * 2 + kparams["w3"].size * 2
                        + kparams["bias_pack"].size * 4 + b_pad * OUT_W * 2),
    )

    out = pl.pallas_call(
        _critic_kernel,
        out_shape=jax.ShapeDtypeStruct((b_pad, OUT_W), jnp.bfloat16),
        grid_spec=pltpu.PrefetchScalarGridSpec(
            num_scalar_prefetch=0,
            grid=grid,
            in_specs=[
                pl.BlockSpec((tile_b, repr_dim), lambda i: (i, 0)),
                pl.BlockSpec((tile_b, adim), lambda i: (i, 0)),
                pl.BlockSpec(kparams["wt"].shape, lambda i: (0, 0)),
                pl.BlockSpec(kparams["w1"].shape, lambda i: (0, 0)),
                pl.BlockSpec(kparams["w2"].shape, lambda i: (0, 0)),
                pl.BlockSpec(kparams["w3"].shape, lambda i: (0, 0)),
                pl.BlockSpec(kparams["bias_pack"].shape, lambda i: (0, 0)),
            ],
            out_specs=pl.BlockSpec((tile_b, OUT_W), lambda i: (i, 0)),
            scratch_shapes=[pltpu.VMEM((tile_b, feat + adim), jnp.bfloat16)],
        ),
        compiler_params=pltpu.CompilerParams(
            dimension_semantics=("parallel",)),
        cost_estimate=cost,
    )(obs, action, kparams["wt"], kparams["w1"], kparams["w2"], kparams["w3"],
      kparams["bias_pack"])

    qpair = out[:B, 0:2].astype(jnp.float32)   # one slice, split for free
    return qpair[:, 0:1], qpair[:, 1:2]


# ---------------------------------------------------------------------------
# Parameter construction (raw f32 layout == the nn.Module), packing for kernel
# ---------------------------------------------------------------------------
def init_raw_params(key, repr_dim, action_dim, feature_dim, hidden_dim):
    keys = jax.random.split(key, 16)
    it = iter(keys)

    def lin(k, fan_in, fan_out, scale=0.05):
        return scale * jax.random.normal(k, (fan_in, fan_out), jnp.float32)

    p = {}
    p["wt"] = lin(next(it), repr_dim, feature_dim)
    p["bt"] = jnp.zeros((1, feature_dim), jnp.float32)
    p["ln_g"] = jnp.ones((1, feature_dim), jnp.float32)
    p["ln_b"] = jnp.zeros((1, feature_dim), jnp.float32)
    for name in ("q1", "q2"):
        p[f"{name}_w1h"] = lin(next(it), feature_dim, hidden_dim)
        p[f"{name}_w1a"] = lin(next(it), action_dim, hidden_dim)
        p[f"{name}_b1"] = jnp.zeros((1, hidden_dim), jnp.float32)
        p[f"{name}_w2"] = lin(next(it), hidden_dim, hidden_dim)
        p[f"{name}_b2"] = jnp.zeros((1, hidden_dim), jnp.float32)
        p[f"{name}_w3"] = lin(next(it), hidden_dim, 1)
        p[f"{name}_b3"] = jnp.zeros((1, 1), jnp.float32)
    return p


def pack_params(p, feature_dim, action_dim, hidden_dim):
    """Fuse / cast the raw params into the kernel's packed layout."""
    H, H2 = hidden_dim, 2 * hidden_dim
    kp = {}
    kp["wt"] = p["wt"]  # trunk stays f32
    # layer 1: heads fused along N, then [h | act] rows stacked along K
    w1h = jnp.concatenate([p["q1_w1h"], p["q2_w1h"]], axis=1)
    w1a = jnp.concatenate([p["q1_w1a"], p["q2_w1a"]], axis=1)
    kp["w1"] = jnp.concatenate([w1h, w1a], axis=0).astype(jnp.bfloat16)
    # layer 2 block-diagonal
    w2 = jnp.zeros((H2, H2), jnp.float32)
    w2 = w2.at[:H, :H].set(p["q1_w2"]).at[H:, H:].set(p["q2_w2"])
    kp["w2"] = w2.astype(jnp.bfloat16)
    # layer 3 fused into a lane-dense (2H, 128) weight
    w3 = jnp.zeros((H2, OUT_W), jnp.float32)
    w3 = w3.at[:H, 0:1].set(p["q1_w3"]).at[H:, 1:2].set(p["q2_w3"])
    kp["w3"] = w3.astype(jnp.bfloat16)
    # all 1-row vectors packed into one (6, W) f32 array
    width = max(feature_dim, H2, OUT_W)
    bias = jnp.zeros((6, width), jnp.float32)
    bias = bias.at[0, :feature_dim].set(p["bt"][0])
    bias = bias.at[1, :feature_dim].set(p["ln_g"][0])
    bias = bias.at[2, :feature_dim].set(p["ln_b"][0])
    bias = bias.at[3, :H2].set(jnp.concatenate([p["q1_b1"][0], p["q2_b1"][0]]))
    bias = bias.at[4, :H2].set(jnp.concatenate([p["q1_b2"][0], p["q2_b2"][0]]))
    bias = bias.at[5, 0].set(p["q1_b3"][0, 0])
    bias = bias.at[5, 1].set(p["q2_b3"][0, 0])
    kp["bias_pack"] = bias
    return kp


def critic_reference(obs, action, p):
    """Pure-JAX f32 reference matching the nn.Module forward."""
    z = obs @ p["wt"] + p["bt"]
    mean = z.mean(-1, keepdims=True)
    var = ((z - mean) ** 2).mean(-1, keepdims=True)
    h = jnp.tanh((z - mean) / jnp.sqrt(var + 1e-5) * p["ln_g"] + p["ln_b"])

    def q(name):
        x = h @ p[f"{name}_w1h"] + action @ p[f"{name}_w1a"] + p[f"{name}_b1"]
        x = jnp.maximum(x, 0.0)
        x = jnp.maximum(x @ p[f"{name}_w2"] + p[f"{name}_b2"], 0.0)
        return x @ p[f"{name}_w3"] + p[f"{name}_b3"]

    return q("q1"), q("q2")


if __name__ == "__main__":
    B, REPR_DIM, ACTION_DIM, FEATURE_DIM, HIDDEN_DIM = 8, 32, 4, 64, 32

    key = jax.random.PRNGKey(0)
    k_obs, k_act, k_par = jax.random.split(key, 3)
    obs = jax.random.normal(k_obs, (B, REPR_DIM), jnp.float32)
    action = jax.random.normal(k_act, (B, ACTION_DIM), jnp.float32)

    raw = init_raw_params(k_par, REPR_DIM, ACTION_DIM, FEATURE_DIM, HIDDEN_DIM)
    kparams = pack_params(raw, FEATURE_DIM, ACTION_DIM, HIDDEN_DIM)

    q1, q2 = critic_forward(obs, action, kparams)
    jax.block_until_ready((q1, q2))

    r1, r2 = critic_reference(obs, action, raw)
    assert q1.shape == (B, 1) and q2.shape == (B, 1)
    # bf16 head matmuls + bf16 output -> compare to f32 reference loosely
    assert jnp.allclose(q1, r1, atol=2e-2, rtol=2e-2), (q1, r1)
    assert jnp.allclose(q2, r2, atol=2e-2, rtol=2e-2), (q2, r2)

    print("KERNEL_OK")
</pallas_src>

<mosaic_0001>
module attributes {stable_mosaic.version = 11 : i64} {
  func.func @_critic_kernel(%arg0: i32, %arg1: memref<8x32xf32, #tpu.memory_space<vmem>>, %arg2: memref<8x4xf32, #tpu.memory_space<vmem>>, %arg3: memref<32x64xf32, #tpu.memory_space<vmem>>, %arg4: memref<68x64xbf16, #tpu.memory_space<vmem>>, %arg5: memref<64x64xbf16, #tpu.memory_space<vmem>>, %arg6: memref<64x128xbf16, #tpu.memory_space<vmem>>, %arg7: memref<6x128xf32, #tpu.memory_space<vmem>>, %arg8: memref<8x128xbf16, #tpu.memory_space<vmem>>, %arg9: memref<8x68xbf16, #tpu.memory_space<vmem>>) attributes {dimension_semantics = [#tpu.dimension_semantics<parallel>], iteration_bounds = array<i64: 1>, scalar_prefetch = 0 : i64, scratch_operands = 1 : i64, tpu.core_type = #tpu.core_type<tc>, window_params = [{transform_indices = @transform_0, window_bounds = array<i64: 8, 32>}, {transform_indices = @transform_1, window_bounds = array<i64: 8, 4>}, {pipeline_mode = #tpu.pipeline_mode<synchronous>, transform_indices = @transform_2, window_bounds = array<i64: 32, 64>}, {pipeline_mode = #tpu.pipeline_mode<synchronous>, transform_indices = @transform_3, window_bounds = array<i64: 68, 64>}, {pipeline_mode = #tpu.pipeline_mode<synchronous>, transform_indices = @transform_4, window_bounds = array<i64: 64, 64>}, {pipeline_mode = #tpu.pipeline_mode<synchronous>, transform_indices = @transform_5, window_bounds = array<i64: 64, 128>}, {pipeline_mode = #tpu.pipeline_mode<synchronous>, transform_indices = @transform_6, window_bounds = array<i64: 6, 128>}, {transform_indices = @transform_7, window_bounds = array<i64: 8, 128>}]} {
    %c0 = arith.constant 0 : index
    %c0_0 = arith.constant 0 : index
    %0 = vector.load %arg7[%c0, %c0_0] : memref<6x128xf32, #tpu.memory_space<vmem>>, vector<1x64xf32>
    %c1 = arith.constant 1 : index
    %c0_1 = arith.constant 0 : index
    %1 = vector.load %arg7[%c1, %c0_1] : memref<6x128xf32, #tpu.memory_space<vmem>>, vector<1x64xf32>
    %c2 = arith.constant 2 : index
    %c0_2 = arith.constant 0 : index
    %2 = vector.load %arg7[%c2, %c0_2] : memref<6x128xf32, #tpu.memory_space<vmem>>, vector<1x64xf32>
    %c3 = arith.constant 3 : index
    %c0_3 = arith.constant 0 : index
    %3 = vector.load %arg7[%c3, %c0_3] : memref<6x128xf32, #tpu.memory_space<vmem>>, vector<1x64xf32>
    %c4 = arith.constant 4 : index
    %c0_4 = arith.constant 0 : index
    %4 = vector.load %arg7[%c4, %c0_4] : memref<6x128xf32, #tpu.memory_space<vmem>>, vector<1x64xf32>
    %c5 = arith.constant 5 : index
    %c0_5 = arith.constant 0 : index
    %5 = vector.load %arg7[%c5, %c0_5] : memref<6x128xf32, #tpu.memory_space<vmem>>, vector<1x128xf32>
    %c0_6 = arith.constant 0 : index
    %c0_7 = arith.constant 0 : index
    %6 = vector.load %arg1[%c0_6, %c0_7] : memref<8x32xf32, #tpu.memory_space<vmem>>, vector<8x32xf32>
    %c0_8 = arith.constant 0 : index
    %c0_9 = arith.constant 0 : index
    %7 = vector.load %arg3[%c0_8, %c0_9] : memref<32x64xf32, #tpu.memory_space<vmem>>, vector<32x64xf32>
    %cst = arith.constant dense<0.000000e+00> : vector<8x64xf32>
    %8 = tpu.matmul %6, %7, %cst {dimension_numbers = #tpu.dot_dimension_numbers<[1], [0], [0], [1], [0, 0, 1, 1], [], []>} : vector<8x32xf32>, vector<32x64xf32>, vector<8x64xf32> -> vector<8x64xf32>
    %9 = vector.broadcast %0 : vector<1x64xf32> to vector<8x64xf32>
    %10 = arith.addf %8, %9 : vector<8x64xf32>
    %cst_10 = arith.constant dense<0.000000e+00> : vector<8xf32>
    %11 = vector.multi_reduction <add>, %10, %cst_10 [1] : vector<8x64xf32> to vector<8xf32>
    %12 = vector.shape_cast %11 : vector<8xf32> to vector<8x1xf32>
    %cst_11 = arith.constant 6.400000e+01 : f32
    %13 = vector.broadcast %cst_11 : f32 to vector<8x1xf32>
    %14 = arith.divf %12, %13 : vector<8x1xf32>
    %15 = vector.broadcast %14 : vector<8x1xf32> to vector<8x64xf32>
    %16 = arith.subf %10, %15 : vector<8x64xf32>
    %17 = arith.mulf %16, %16 : vector<8x64xf32>
    %cst_12 = arith.constant dense<0.000000e+00> : vector<8xf32>
    %18 = vector.multi_reduction <add>, %17, %cst_12 [1] : vector<8x64xf32> to vector<8xf32>
    %19 = vector.shape_cast %18 : vector<8xf32> to vector<8x1xf32>
    %cst_13 = arith.constant 6.400000e+01 : f32
    %20 = vector.broadcast %cst_13 : f32 to vector<8x1xf32>
    %21 = arith.divf %19, %20 : vector<8x1xf32>
    %cst_14 = arith.constant 9.99999974E-6 : f32
    %22 = vector.broadcast %cst_14 : f32 to vector<8x1xf32>
    %23 = arith.addf %21, %22 : vector<8x1xf32>
    %24 = math.rsqrt %23 : vector<8x1xf32>
    %25 = vector.broadcast %24 : vector<8x1xf32> to vector<8x64xf32>
    %26 = arith.mulf %16, %25 : vector<8x64xf32>
    %27 = vector.broadcast %1 : vector<1x64xf32> to vector<8x64xf32>
    %28 = arith.mulf %26, %27 : vector<8x64xf32>
    %29 = vector.broadcast %2 : vector<1x64xf32> to vector<8x64xf32>
    %30 = arith.addf %28, %29 : vector<8x64xf32>
    %31 = math.tanh %30 : vector<8x64xf32>
    %32 = arith.truncf %31 : vector<8x64xf32> to vector<8x64xbf16>
    %c0_15 = arith.constant 0 : index
    %c0_16 = arith.constant 0 : index
    %33 = vector.load %arg9[%c0_15, %c0_16] : memref<8x68xbf16, #tpu.memory_space<vmem>>, vector<8x64xbf16>
    tpu.vector_store %arg9[%c0_15, %c0_16], %32 {strides = array<i32>} : memref<8x68xbf16, #tpu.memory_space<vmem>>, vector<8x64xbf16>,
    %c0_17 = arith.constant 0 : index
    %c0_18 = arith.constant 0 : index
    %34 = vector.load %arg2[%c0_17, %c0_18] : memref<8x4xf32, #tpu.memory_space<vmem>>, vector<8x4xf32>
    %35 = arith.truncf %34 : vector<8x4xf32> to vector<8x4xbf16>
    %c0_19 = arith.constant 0 : index
    %c64 = arith.constant 64 : index
    %36 = vector.load %arg9[%c0_19, %c64] : memref<8x68xbf16, #tpu.memory_space<vmem>>, vector<8x4xbf16>
    tpu.vector_store %arg9[%c0_19, %c64], %35 {strides = array<i32>} : memref<8x68xbf16, #tpu.memory_space<vmem>>, vector<8x4xbf16>,
    %c0_20 = arith.constant 0 : index
    %c0_21 = arith.constant 0 : index
    %37 = vector.load %arg9[%c0_20, %c0_21] : memref<8x68xbf16, #tpu.memory_space<vmem>>, vector<8x68xbf16>
    %c0_22 = arith.constant 0 : index
    %c0_23 = arith.constant 0 : index
    %38 = vector.load %arg4[%c0_22, %c0_23] : memref<68x64xbf16, #tpu.memory_space<vmem>>, vector<68x64xbf16>
    %cst_24 = arith.constant dense<0.000000e+00> : vector<8x64xf32>
    %39 = tpu.matmul %37, %38, %cst_24 {dimension_numbers = #tpu.dot_dimension_numbers<[1], [0], [0], [1], [0, 0, 1, 1], [], []>} : vector<8x68xbf16>, vector<68x64xbf16>, vector<8x64xf32> -> vector<8x64xf32>
    %40 = vector.broadcast %3 : vector<1x64xf32> to vector<8x64xf32>
    %41 = arith.addf %39, %40 : vector<8x64xf32>
    %cst_25 = arith.constant 0.000000e+00 : f32
    %42 = vector.broadcast %cst_25 : f32 to vector<8x64xf32>
    %43 = arith.maximumf %41, %42 : vector<8x64xf32>
    %44 = arith.truncf %43 : vector<8x64xf32> to vector<8x64xbf16>
    %c0_26 = arith.constant 0 : index
    %c0_27 = arith.constant 0 : index
    %45 = vector.load %arg5[%c0_26, %c0_27] : memref<64x64xbf16, #tpu.memory_space<vmem>>, vector<64x64xbf16>
    %cst_28 = arith.constant dense<0.000000e+00> : vector<8x64xf32>
    %46 = tpu.matmul %44, %45, %cst_28 {dimension_numbers = #tpu.dot_dimension_numbers<[1], [0], [0], [1], [0, 0, 1, 1], [], []>} : vector<8x64xbf16>, vector<64x64xbf16>, vector<8x64xf32> -> vector<8x64xf32>
    %47 = vector.broadcast %4 : vector<1x64xf32> to vector<8x64xf32>
    %48 = arith.addf %46, %47 : vector<8x64xf32>
    %cst_29 = arith.constant 0.000000e+00 : f32
    %49 = vector.broadcast %cst_29 : f32 to vector<8x64xf32>
    %50 = arith.maximumf %48, %49 : vector<8x64xf32>
    %51 = arith.truncf %50 : vector<8x64xf32> to vector<8x64xbf16>
    %c0_30 = arith.constant 0 : index
    %c0_31 = arith.constant 0 : index
    %52 = vector.load %arg6[%c0_30, %c0_31] : memref<64x128xbf16, #tpu.memory_space<vmem>>, vector<64x128xbf16>
    %cst_32 = arith.constant dense<0.000000e+00> : vector<8x128xf32>
    %53 = tpu.matmul %51, %52, %cst_32 {dimension_numbers = #tpu.dot_dimension_numbers<[1], [0], [0], [1], [0, 0, 1, 1], [], []>} : vector<8x64xbf16>, vector<64x128xbf16>, vector<8x128xf32> -> vector<8x128xf32>
    %54 = vector.broadcast %5 : vector<1x128xf32> to vector<8x128xf32>
    %55 = arith.addf %53, %54 : vector<8x128xf32>
    %56 = arith.truncf %55 : vector<8x128xf32> to vector<8x128xbf16>
    %c0_33 = arith.constant 0 : index
    %c0_34 = arith.constant 0 : index
    %57 = vector.load %arg8[%c0_33, %c0_34] : memref<8x128xbf16, #tpu.memory_space<vmem>>, vector<8x128xbf16>
    tpu.vector_store %arg8[%c0_33, %c0_34], %56 {strides = array<i32>} : memref<8x128xbf16, #tpu.memory_space<vmem>>, vector<8x128xbf16>,
    return
  }
  func.func @transform_0(%arg0: i32) -> (i32, i32) {
    %c0_i32 = arith.constant 0 : i32
    %c0_i32_0 = arith.constant 0 : i32
    return %arg0, %c0_i32 : i32, i32
  }
  func.func @transform_1(%arg0: i32) -> (i32, i32) {
    %c0_i32 = arith.constant 0 : i32
    %c0_i32_0 = arith.constant 0 : i32
    return %arg0, %c0_i32 : i32, i32
  }
  func.func @transform_2(%arg0: i32) -> (i32, i32) {
    %c0_i32 = arith.constant 0 : i32
    %c0_i32_0 = arith.constant 0 : i32
    %c0_i32_1 = arith.constant 0 : i32
    return %c0_i32, %c0_i32_0 : i32, i32
  }
  func.func @transform_3(%arg0: i32) -> (i32, i32) {
    %c0_i32 = arith.constant 0 : i32
    %c0_i32_0 = arith.constant 0 : i32
    %c0_i32_1 = arith.constant 0 : i32
    return %c0_i32, %c0_i32_0 : i32, i32
  }
  func.func @transform_4(%arg0: i32) -> (i32, i32) {
    %c0_i32 = arith.constant 0 : i32
    %c0_i32_0 = arith.constant 0 : i32
    %c0_i32_1 = arith.constant 0 : i32
    return %c0_i32, %c0_i32_0 : i32, i32
  }
  func.func @transform_5(%arg0: i32) -> (i32, i32) {
    %c0_i32 = arith.constant 0 : i32
    %c0_i32_0 = arith.constant 0 : i32
    %c0_i32_1 = arith.constant 0 : i32
    return %c0_i32, %c0_i32_0 : i32, i32
  }
  func.func @transform_6(%arg0: i32) -> (i32, i32) {
    %c0_i32 = arith.constant 0 : i32
    %c0_i32_0 = arith.constant 0 : i32
    %c0_i32_1 = arith.constant 0 : i32
    return %c0_i32, %c0_i32_0 : i32, i32
  }
  func.func @transform_7(%arg0: i32) -> (i32, i32) {
    %c0_i32 = arith.constant 0 : i32
    %c0_i32_0 = arith.constant 0 : i32
    return %arg0, %c0_i32 : i32, i32
  }
}

</mosaic_0001>

<bundles_post_ra>
// kernel: critic_forward.1
= control target key start
LH: loop header
LB: loop body
LE: loop exit
PB: predicated region body
PF: predicated region fallthrough
CT: control target
= control target key end

     0   :  { %12 = vsyncpa [#allocation4], 0  ;;  %s762_s0 = inlined_call_operand.hbm [shape: f32[8,32], index: 0, kind: input, shape index: {}]   ;;  %s763_s1 = inlined_call_operand.vmem [shape: f32[8,4], index: 1, kind: input, shape index: {}]   ;;  %s764_s2 = inlined_call_operand.vmem [shape: f32[32,64], index: 2, kind: input, shape index: {}]   ;;  %s765_s3 = inlined_call_operand.vmem [shape: bf16[68,64], index: 3, kind: input, shape index: {}]   ;;  %s766_s4 = inlined_call_operand.vmem [shape: bf16[64,64], index: 4, kind: input, shape index: {}]   ;;  %s767_s5 = inlined_call_operand.vmem [shape: bf16[64,128], index: 5, kind: input, shape index: {}]   ;;  %s768_s6 = inlined_call_operand.hbm [shape: f32[6,128], index: 6, kind: input, shape index: {}]   ;;  %s769_s7 = inlined_call_operand.vmem [shape: bf16[8,128], index: 7, kind: output, shape index: {}]  }
   0x1   :  { %13 = vsyncpa [#allocation6], 0  ;;  %s610_s24 = smov [#allocation3]   ;;  %s611_s26 = smov [#allocation5]  }
   0x2   :  { %s20_s25 = sshll.u32 %s610_s24, 4  ;;  %s40_s27 = sshll.u32 %s611_s26, 4  ;;  %s21_s25 = int_to_ptr.vmem [resolvable:$true] %s20_s25  ;;  %s41_s27 = int_to_ptr.vmem [resolvable:$true] %s40_s27 }
   0x3   :  { %s562_s30 = scalar_lea.hbm %s762_s0, 128 }
   0x4   :  { %p563_p0 = scmp.ne.s32.totalorder %s762_s0, %s562_s30  ;;  %p566_p1 = scmp.lt.u32.totalorder %s562_s30, %s762_s0 }
   0x6   :  { %p568_p2 = pnand %p566_p1, %p563_p0 }
   0x8   :  { %571 = shalt.err (!%p568_p2)
}
   0x9   :  { %s572_s12 = scalar_lea.vmem %s21_s25, 128  ;;  %p577_p4 = scmp.lt.s32.totalorder %s21_s25, %s21_s25 }
   0xa   :  { %p573_p3 = scmp.ne.s32.totalorder %s21_s25, %s572_s12  ;;  %p578_p5 = scmp.lt.s32.totalorder %s572_s12, %s572_s12 }
   0xc   :  { %p579_p6 = por %p578_p5, %p577_p4 }
   0xe   :  { %p580_p7 = pnand %p579_p6, %p573_p3 }
  0x10   :  { %583 = shalt.err (!%p580_p7)
}
  0x11   :  { %23 = dma.hbm_to_vmem [thread:$0]  %s762_s0, 128, %s21_s25, [#allocation4]  }
  0x12   :  { %s584_s17 = scalar_lea.hbm %s768_s6, 128 }
  0x13   :  { %p585_p8 = scmp.ne.s32.totalorder %s768_s6, %s584_s17  ;;  %p588_p9 = scmp.lt.u32.totalorder %s584_s17, %s768_s6 }
  0x15   :  { %p590_p10 = pnand %p588_p9, %p585_p8 }
  0x17   :  { %593 = shalt.err (!%p590_p10)
}
  0x18   :  { %s594_s22 = scalar_lea.vmem %s41_s27, 128  ;;  %p599_p12 = scmp.lt.s32.totalorder %s41_s27, %s41_s27 }
  0x19   :  { %p595_p11 = scmp.ne.s32.totalorder %s41_s27, %s594_s22  ;;  %p600_p13 = scmp.lt.s32.totalorder %s594_s22, %s594_s22 }
  0x1b   :  { %p601_p0 = por %p600_p13, %p599_p12 }
  0x1d   :  { %p602_p1 = pnand %p601_p0, %p595_p11 }
  0x1f   :  { %605 = shalt.err (!%p602_p1)
}
  0x20   :  { %43 = dma.hbm_to_vmem [thread:$0]  %s768_s6, 128, %s41_s27, [#allocation6]  }
  0x21   :  { %606 = dma.done.wait [#allocation4], 128  }
  0x22   :  { %607 = vsyncadd [#allocation4], 4294967168 }
  0x23   :  { %608 = dma.done.wait [#allocation6], 128  }
  0x24   :  { %609 = vsyncadd [#allocation6], 4294967168  ;;  %v612_v0 = vmov 0.0|0.0   ;;  %vm613_vm0 = vmmov 0   ;;  %v614_v1 = vmov 0.0   ;;  %v58_v2 = vld [vmem:[%s764_s2] sm:$0xff] }
  0x25   :  { %533 = vmatprep.subr.bf16.mxu0 %v612_v0  ;;  %492 = vmatprep.mubr.msk.f32.mxu0 %vm613_vm0, %v614_v1  ;;  %v59_v3 = vld [vmem:[%s764_s2 + $0x8] sm:$0xff]  ;;  %v60_v4 = vld [vmem:[%s764_s2 + $0x10] sm:$0xff]  ;;  %v61_v6 = vld [vmem:[%s764_s2 + $0x18] sm:$0xff]  ;;  %vm66_vm1 = vcmask 261120   ;;  %vm140_vm2 = vcmask 523264   ;;  %s615_s9 = smov 64  }
  0x26   :  { %495 = vmatprep.subr.bf16.mxu1 %v614_v1  ;;  %505 = vmatprep.mubr.msk.bf16.mxu1 %vm613_vm0, %v614_v1  ;;  %v534_v5 = vpack.c.bf16 %v59_v3, %v58_v2  ;;  %v537_v7 = vpack.c.bf16 %v61_v6, %v60_v4  ;;  %v57_v8 = vld [vmem:[#allocation3] sm:$0xff]  ;;  %v438_v9 = vld [vmem:[#allocation5] ss:$0 sm:$0xff]  ;;  %v547_v23 = vld [vmem:[%s765_s3 + $0x10] sm:$0xff]   ;;  %vm224_vm3 = vcmask 1041408   ;;  %vm167_vm4 = vcmask 519168  }
  0x27   :  { %v169_v14 = vld [vmem:[%s763_s1] sm:$0xff]  ;;  %v546_v22 = vld [vmem:[%s765_s3 + $0x8] sm:$0xff]   ;;  %v548_v24 = vld [vmem:[%s765_s3 + $0x18] sm:$0xff]   ;;  %vm177_vm5 = vcmask 552448   ;;  %vm220_vm6 = vcmask 556032  }
  0x28   :  { %535 = vmatpush3.bf16.msra.mxu0 %v534_v5  ;;  %v462_v15 = vpack.c.bf16 %v169_v14, %v169_v14  ;;  %v545_v21 = vld [vmem:[%s765_s3] sm:$0xff]   ;;  %v551_v28 = vld [vmem:[%s766_s4 + $0x8] sm:$0xff]   ;;  %v552_v42 = vld [vmem:[%s766_s4 + $0x10] sm:$0xff]  }
  0x29   :  { %536 = vmatprep.subr.bf16.mxu0 %v612_v0  ;;  %496 = vmatpush3.bf16.msra.mxu1 %v545_v21  ;;  %v549_v25 = vld [vmem:[%s765_s3 + $0x20] ss:$0 sps:$4 sm:$0x33]   ;;  %v440_v33 = vld [vmem:[#allocation5 + $0x1] ss:$0 sm:$0xff]  ;;  %v553_v43 = vld [vmem:[%s766_s4 + $0x18] sm:$0xff]  }
  0x2a   :  { %174 = vrot.lane.b32.xlu1 %v462_v15, %s615_s9  ;;  %497 = vmatprep.subr.bf16.mxu1 %v614_v1  ;;  %v226_v26 = vsel %vm224_vm3, %v549_v25, 0  ;;  %v550_v27 = vld [vmem:[%s766_s4] sm:$0xff]   ;;  %v441_v35 = vld [vmem:[#allocation5 + $0x2] ss:$0 sm:$0xff]  ;;  %v443_v46 = vld [vmem:[#allocation5 + $0x3] ss:$0 sm:$0xff] }
  0x2b   :  { %v554_v44 = vld [vmem:[%s767_s5] sm:$0xff]   ;;  %v555_v45 = vld [vmem:[%s767_s5 + $0x8] sm:$0xff]   ;;  %v556_v54 = vld [vmem:[%s767_s5 + $0x10] sm:$0xff]  }
  0x2c   :  { %538 = vmatpush3.bf16.msra.mxu0 %v537_v7  ;;  %v557_v55 = vld [vmem:[%s767_s5 + $0x18] sm:$0xff]   ;;  %v450_v56 = vld [vmem:[#allocation5 + $0x4] ss:$0 sm:$0xff]  ;;  %v456_v0 = vld [vmem:[#allocation5 + $0x5] ss:$0 sm:$0xff] }
  0x2d   :  { %509 = vmatprep.subr.bf16.mxu0 %v614_v1  ;;  %498 = vmatpush3.bf16.msra.mxu1 %v546_v22 }
  0x2e   :  { %499 = vmatprep.subr.bf16.mxu1 %v614_v1 }
  0x2f   :  { %493 = vmatmul.mubr.msk.f32.vlgmr.msra.gmra.mrb[0].mxu0 %vm66_vm1, %v57_v8 }
  0x30   :  { %517 = vmatprep.mubr.msk.bf16.mxu0 %vm613_vm0, %v614_v1  ;;  %510 = vmatpush3.bf16.msra.mxu0 %v550_v27 }
  0x31   :  { %500 = vmatpush3.bf16.msra.mxu1 %v547_v23  ;;  %511 = vmatprep.subr.bf16.mxu0 %v614_v1 }
  0x32   :  { %501 = vmatprep.subr.bf16.mxu1 %v614_v1 }
  0x34   :  { %512 = vmatpush3.bf16.msra.mxu0 %v551_v28 }
  0x35   :  { %502 = vmatpush3.bf16.msra.mxu1 %v548_v24  ;;  %513 = vmatprep.subr.bf16.mxu0 %v614_v1 }
  0x36   :  { %503 = vmatprep.subr.bf16.mxu1 %v614_v1 }
  0x38   :  { %514 = vmatpush3.bf16.msra.mxu0 %v552_v42 }
  0x39   :  { %504 = vmatpush3.bf16.msra.mxu1 %v226_v26  ;;  %515 = vmatprep.subr.bf16.mxu0 %v614_v1 }
  0x3a   :  { %521 = vmatprep.subr.bf16.mxu1 %v614_v1 }
  0x3c   :  { %516 = vmatpush3.bf16.msra.mxu0 %v553_v43 }
  0x9c   :  { %v175_v39 = vpop.permute.xlu1 %174 }
 0x102   :  { %v136_v10 = vpop.f32.mrb[0].mxu0 }
 0x103   :  { %v137_v11 = vadd.f32 %v438_v9, %v136_v10  ;;  %v494_v12 = vpop.f32.mrb[1].mxu0 }
 0x105   :  { %v141_v13 = vsel %vm140_vm2, %v137_v11, 0.0 }
 0x106   :  { %142 = vadd.xlane.f32.xlu0 %v141_v13 }
 0x193   :  { %v143_v16 = vpop.xlane.xlu0 %142 }
 0x194   :  { %v145_v17 = vmul.f32 0.015625, %v143_v16 }
 0x196   :  { %v146_v18 = vsub.f32 %v137_v11, %v145_v17 }
 0x198   :  { %v147_v19 = vmul.f32 %v146_v18, %v146_v18 }
 0x19a   :  { %v148_v20 = vsel %vm140_vm2, %v147_v19, 0.0 }
 0x19b   :  { %149 = vadd.xlane.f32.xlu0 %v148_v20 }
 0x228   :  { %v150_v29 = vpop.xlane.xlu0 %149 }
 0x229   :  { %v151_v30 = vmul.f32 0.015625, %v150_v29 }
 0x22b   :  { %v152_v31 = vadd.f32 1e-05, %v151_v30 }
 0x22d   :  { %558 = vrsqrt.f32 %v152_v31 }
 0x237   :  { %v559_v32 = vpop.eup %558 }
 0x238   :  { %v154_v34 = vmul.f32 %v559_v32, %v146_v18 }
 0x23a   :  { %v159_v36 = vmul.f32 %v440_v33, %v154_v34 }
 0x23c   :  { %v164_v37 = vadd.f32 %v441_v35, %v159_v36 }
 0x23e   :  { %560 = vtanh.f32 %v164_v37 }
 0x248   :  { %v561_v38 = vpop.eup %560 }
 0x249   :  { %v166_v40 = vpack.c.bf16 %v561_v38, %v561_v38 }
 0x24b   :  { %168 = vst.msk [vmem:[#allocation2] sm:$0xf] %vm167_vm4, %v166_v40 }
 0x24c   :  { %178 = vst.msk [vmem:[#allocation2] sm:$0xf] %vm177_vm5, %v175_v39 }
 0x253   :  { %v179_v41 = vld [vmem:[#allocation2] sm:$0xf] }
 0x254   :  { %506 = vmatmul.mubr.msk.bf16.vlgmr.msra.gmra.mrb[0].mxu1 %vm220_vm6, %v179_v41 }
 0x255   :  { %529 = vmatprep.mubr.msk.bf16.mxu1 %vm613_vm0, %v614_v1  ;;  %522 = vmatpush3.bf16.msra.mxu1 %v554_v44 }
 0x256   :  { %523 = vmatprep.subr.bf16.mxu1 %v614_v1 }
 0x259   :  { %524 = vmatpush3.bf16.msra.mxu1 %v555_v45 }
 0x25a   :  { %525 = vmatprep.subr.bf16.mxu1 %v614_v1 }
 0x25d   :  { %526 = vmatpush3.bf16.msra.mxu1 %v556_v54 }
 0x25e   :  { %527 = vmatprep.subr.bf16.mxu1 %v614_v1 }
 0x261   :  { %528 = vmatpush3.bf16.msra.mxu1 %v557_v55 }
 0x327   :  { %v262_v47 = vpop.f32.mrb[0].mxu1 }
 0x328   :  { %v263_v48 = vadd.f32 %v443_v46, %v262_v47  ;;  %v507_v49 = vpop.f32.mrb[1].mxu1 }
 0x329   :  { %v265_v50 = vpop.f32.mrb[2].mxu1 }
 0x32a   :  { %v268_v51 = vmax.f32 %v263_v48, 0.0  ;;  %v508_v52 = vpop.f32.mrb[3].mxu1 }
 0x32c   :  { %v269_v53 = vpack.c.bf16 %v268_v51, %v268_v51 }
 0x32e   :  { %518 = vmatmul.mubr.msk.bf16.vlgmr.msra.gmra.mrb[4].mxu0 %vm140_vm2, %v269_v53 }
 0x401   :  { %v343_v57 = vpop.f32.mrb[4].mxu0 }
 0x402   :  { %v344_v58 = vadd.f32 %v450_v56, %v343_v57  ;;  %v519_v59 = vpop.f32.mrb[5].mxu0 }
 0x403   :  { %v346_v60 = vpop.f32.mrb[6].mxu0 }
 0x404   :  { %v349_v61 = vmax.f32 %v344_v58, 0.0  ;;  %v520_v62 = vpop.f32.mrb[7].mxu0 }
 0x406   :  { %v350_v63 = vpack.c.bf16 %v349_v61, %v349_v61 }
 0x408   :  { %530 = vmatmul.mubr.msk.bf16.vlgmr.msra.gmra.mrb[4].mxu1 %vm140_vm2, %v350_v63 }
 0x4db   :  { %v424_v2 = vpop.f32.mrb[4].mxu1 }
 0x4dc   :  { %v425_v3 = vadd.f32 %v456_v0, %v424_v2  ;;  %v531_v4 = vpop.f32.mrb[5].mxu1 }
 0x4dd   :  { %v427_v1 = vpop.f32.mrb[6].mxu1 }
 0x4de   :  { %v430_v5 = vpack.c.bf16 %v425_v3, %v425_v3  ;;  %v532_v6 = vpop.f32.mrb[7].mxu1 }
 0x4e0   :  { %431 = vst [vmem:[%s769_s7] sm:$0xf] %v430_v5 }
 0x4e1   :  { %436 = vsyncpa [#allocation4], 1 }
 0x4e2   :  { %437 = vsyncpa [#allocation6], 1 }

</bundles_post_ra>
